<compile_context>
chip_gen: v5e
topology: v5e:2x2
jax: 0.10.0
libtpu: 0.0.40
codegen_flags: <defaults>
</compile_context>

<pallas_src>
import jax
import jax.numpy as jnp
from jax.experimental import pallas as pl
from jax.experimental.pallas import tpu as pltpu

# Model dims (from the PyTorch module) and padded layout dims.
N_IN, H1, H2, H3, N_OUT = 68, 256, 512, 128, 13
K_PAD = 128     # first-layer input features padded 68 -> 128 (inside kernel)
OUT_PAD = 128   # last-layer logits padded 13 -> 128 (lane-aligned MXU output)
NEG_BIG = -1e30


def policy_kernel(x_ref,
                  w1_ref, b1_ref,
                  w2_ref, b2_ref,
                  w3_ref, b3_ref,
                  w4_ref, b4_ref,
                  out_ref,
                  xpad_ref):
    # Zero-pad input features 68 -> 128 inside VMEM (no wrapper-side HBM pad).
    xpad_ref[...] = jnp.zeros_like(xpad_ref)
    xpad_ref[:, :N_IN] = x_ref[...]
    x = xpad_ref[...].astype(jnp.bfloat16)

    # affine1 + ReLU  (bf16 MXU operands, f32 accumulation / elementwise)
    h = jnp.dot(x, w1_ref[...],
                preferred_element_type=jnp.float32) + b1_ref[...]
    h = jnp.maximum(h, 0.0)

    # affine2 + ReLU
    h = jnp.dot(h.astype(jnp.bfloat16), w2_ref[...],
                preferred_element_type=jnp.float32) + b2_ref[...]
    h = jnp.maximum(h, 0.0)

    # affine3 + ReLU
    h = jnp.dot(h.astype(jnp.bfloat16), w3_ref[...],
                preferred_element_type=jnp.float32) + b3_ref[...]
    h = jnp.maximum(h, 0.0)

    # affine4 (logits); padded lanes >= 13 carry a -1e30 bias -> exp underflows
    # to 0, so softmax over the 128 padded lanes equals softmax over the 13.
    logits = jnp.dot(h.astype(jnp.bfloat16), w4_ref[...],
                     preferred_element_type=jnp.float32) + b4_ref[...]

    m = jnp.max(logits, axis=-1, keepdims=True)
    e = jnp.exp(logits - m)
    denom = jnp.sum(e, axis=-1, keepdims=True)
    probs = e / denom                    # exact normalization (rows sum to 1)
    out_ref[...] = probs[:, :N_OUT]      # store only the 13 real columns


def _round_up(v, m):
    return ((v + m - 1) // m) * m


def policy_forward(x, params, *, tb=512):
    """x: (B, 68) f32.  params: output of prepare_params().  Returns (B, 13) f32."""
    (w1p, b1), (w2, b2), (w3, b3), (w4p, b4p) = params
    x = x.astype(jnp.float32)
    B = x.shape[0]

    # Batch tile: multiple of 8 (sublane), capped at tb; when B >= 16 keep at
    # least 2 grid steps so both v7x TensorCores get work.
    TB = min(tb, _round_up(B, 8))
    if B >= 16:
        TB = min(TB, _round_up((B + 1) // 2, 8))
    TB = max(8, (TB // 8) * 8)

    B_pad = _round_up(B, TB)
    if B_pad != B:
        # Batch-only pad (68 cols of f32), no feature padding in HBM.
        x = jnp.zeros((B_pad, N_IN), jnp.float32).at[:B].set(x)

    grid = (B_pad // TB,)

    def const_spec(shape):
        return pl.BlockSpec(shape, lambda i: (0, 0))

    out = pl.pallas_call(
        policy_kernel,
        out_shape=jax.ShapeDtypeStruct((B_pad, N_OUT), jnp.float32),
        grid=grid,
        in_specs=[
            pl.BlockSpec((TB, N_IN), lambda i: (i, 0)),     # x tile (pipelined)
            const_spec((K_PAD, H1)), const_spec((1, H1)),   # w1, b1 (resident)
            const_spec((H1, H2)),    const_spec((1, H2)),   # w2, b2
            const_spec((H2, H3)),    const_spec((1, H3)),   # w3, b3
            const_spec((H3, OUT_PAD)), const_spec((1, OUT_PAD)),  # w4, b4
        ],
        out_specs=pl.BlockSpec((TB, N_OUT), lambda i: (i, 0)),
        scratch_shapes=[pltpu.VMEM((TB, K_PAD), jnp.float32)],
        compiler_params=pltpu.CompilerParams(
            dimension_semantics=("parallel",)),
    )(x, w1p, b1, w2, b2, w3, b3, w4p, b4p)

    return out[:B] if B_pad != B else out


def init_linear(key, in_f, out_f):
    """Deterministic init mimicking torch.nn.Linear default (U(-1/sqrt(in), 1/sqrt(in)))."""
    kw, kb = jax.random.split(key)
    bound = 1.0 / jnp.sqrt(jnp.float32(in_f))
    # stored already transposed: (in_features, out_features)
    w = jax.random.uniform(kw, (in_f, out_f), jnp.float32, -bound, bound)
    b = jax.random.uniform(kb, (1, out_f), jnp.float32, -bound, bound)
    return w, b


def prepare_params(raw_params):
    """Pad + cast raw f32 (in, out) weights to the kernel layout (bf16, padded)."""
    (w1, b1), (w2, b2), (w3, b3), (w4, b4) = raw_params
    w1p = (jnp.zeros((K_PAD, H1), jnp.float32).at[:N_IN, :].set(w1)
           ).astype(jnp.bfloat16)
    w4p = (jnp.zeros((H3, OUT_PAD), jnp.float32).at[:, :N_OUT].set(w4)
           ).astype(jnp.bfloat16)
    b4p = jnp.full((1, OUT_PAD), NEG_BIG, jnp.float32).at[:, :N_OUT].set(b4)
    return ((w1p, b1),
            (w2.astype(jnp.bfloat16), b2),
            (w3.astype(jnp.bfloat16), b3),
            (w4p, b4p))


def reference_forward(x, raw_params):
    """Pure-JAX reference using the same bf16-rounded weights (f32 math)."""
    def bf(w):
        return w.astype(jnp.bfloat16).astype(jnp.float32)
    (w1, b1), (w2, b2), (w3, b3), (w4, b4) = raw_params
    h = jnp.maximum(x @ bf(w1) + b1, 0.0)
    h = jnp.maximum(h @ bf(w2) + b2, 0.0)
    h = jnp.maximum(h @ bf(w3) + b3, 0.0)
    logits = h @ bf(w4) + b4
    return jax.nn.softmax(logits, axis=-1)


if __name__ == "__main__":
    key = jax.random.PRNGKey(0)
    k_in, k_in2, k1, k2, k3, k4 = jax.random.split(key, 6)

    raw_params = (
        init_linear(k1, N_IN, H1),
        init_linear(k2, H1, H2),
        init_linear(k3, H2, H3),
        init_linear(k4, H3, N_OUT),
    )
    params = prepare_params(raw_params)

    # Case 1: B=16 -> TB=8, two batch-grid steps (dual-TC on v7x), no batch pad.
    B = 16
    x = jax.random.normal(k_in, (B, N_IN), jnp.float32)
    out = jax.block_until_ready(policy_forward(x, params))
    ref = reference_forward(x, raw_params)
    assert out.shape == (B, N_OUT)
    # bf16 matmul operands -> loosened tolerances vs. the f32 reference.
    assert jnp.allclose(out, ref, atol=2e-2, rtol=2e-2)
    assert jnp.allclose(jnp.sum(out, axis=-1), 1.0, atol=1e-3)

    # Case 2: B=5 -> exercises the batch-padding path (B_pad=8, single step).
    x2 = jax.random.normal(k_in2, (5, N_IN), jnp.float32)
    out2 = jax.block_until_ready(policy_forward(x2, params))
    ref2 = reference_forward(x2, raw_params)
    assert out2.shape == (5, N_OUT)
    assert jnp.allclose(out2, ref2, atol=2e-2, rtol=2e-2)
    assert jnp.allclose(jnp.sum(out2, axis=-1), 1.0, atol=1e-3)

    print("KERNEL_OK")
</pallas_src>

<mosaic_0001>
module attributes {stable_mosaic.version = 11 : i64} {
  func.func @policy_kernel(%arg0: i32, %arg1: memref<8x68xf32, #tpu.memory_space<vmem>>, %arg2: memref<128x256xbf16, #tpu.memory_space<vmem>>, %arg3: memref<1x256xf32, #tpu.memory_space<vmem>>, %arg4: memref<256x512xbf16, #tpu.memory_space<vmem>>, %arg5: memref<1x512xf32, #tpu.memory_space<vmem>>, %arg6: memref<512x128xbf16, #tpu.memory_space<vmem>>, %arg7: memref<1x128xf32, #tpu.memory_space<vmem>>, %arg8: memref<128x128xbf16, #tpu.memory_space<vmem>>, %arg9: memref<1x128xf32, #tpu.memory_space<vmem>>, %arg10: memref<8x13xf32, #tpu.memory_space<vmem>>, %arg11: memref<8x128xf32, #tpu.memory_space<vmem>>) attributes {dimension_semantics = [#tpu.dimension_semantics<parallel>], iteration_bounds = array<i64: 2>, scalar_prefetch = 0 : i64, scratch_operands = 1 : i64, tpu.core_type = #tpu.core_type<tc>, window_params = [{transform_indices = @transform_0, window_bounds = array<i64: 8, 68>}, {pipeline_mode = #tpu.pipeline_mode<synchronous>, transform_indices = @transform_1, window_bounds = array<i64: 128, 256>}, {pipeline_mode = #tpu.pipeline_mode<synchronous>, transform_indices = @transform_2, window_bounds = array<i64: 1, 256>}, {pipeline_mode = #tpu.pipeline_mode<synchronous>, transform_indices = @transform_3, window_bounds = array<i64: 256, 512>}, {pipeline_mode = #tpu.pipeline_mode<synchronous>, transform_indices = @transform_4, window_bounds = array<i64: 1, 512>}, {pipeline_mode = #tpu.pipeline_mode<synchronous>, transform_indices = @transform_5, window_bounds = array<i64: 512, 128>}, {pipeline_mode = #tpu.pipeline_mode<synchronous>, transform_indices = @transform_6, window_bounds = array<i64: 1, 128>}, {pipeline_mode = #tpu.pipeline_mode<synchronous>, transform_indices = @transform_7, window_bounds = array<i64: 128, 128>}, {pipeline_mode = #tpu.pipeline_mode<synchronous>, transform_indices = @transform_8, window_bounds = array<i64: 1, 128>}, {transform_indices = @transform_9, window_bounds = array<i64: 8, 13>}]} {
    %cst = arith.constant 0.000000e+00 : f32
    %0 = vector.broadcast %cst : f32 to vector<8x128xf32>
    %c0 = arith.constant 0 : index
    %c0_0 = arith.constant 0 : index
    %1 = vector.load %arg11[%c0, %c0_0] : memref<8x128xf32, #tpu.memory_space<vmem>>, vector<8x128xf32>
    tpu.vector_store %arg11[%c0, %c0_0], %0 {strides = array<i32>} : memref<8x128xf32, #tpu.memory_space<vmem>>, vector<8x128xf32>,
    %c0_1 = arith.constant 0 : index
    %c0_2 = arith.constant 0 : index
    %2 = vector.load %arg1[%c0_1, %c0_2] : memref<8x68xf32, #tpu.memory_space<vmem>>, vector<8x68xf32>
    %c0_3 = arith.constant 0 : index
    %c0_4 = arith.constant 0 : index
    %3 = vector.load %arg11[%c0_3, %c0_4] : memref<8x128xf32, #tpu.memory_space<vmem>>, vector<8x68xf32>
    tpu.vector_store %arg11[%c0_3, %c0_4], %2 {strides = array<i32>} : memref<8x128xf32, #tpu.memory_space<vmem>>, vector<8x68xf32>,
    %c0_5 = arith.constant 0 : index
    %c0_6 = arith.constant 0 : index
    %4 = vector.load %arg11[%c0_5, %c0_6] : memref<8x128xf32, #tpu.memory_space<vmem>>, vector<8x128xf32>
    %5 = arith.truncf %4 : vector<8x128xf32> to vector<8x128xbf16>
    %c0_7 = arith.constant 0 : index
    %c0_8 = arith.constant 0 : index
    %6 = vector.load %arg2[%c0_7, %c0_8] : memref<128x256xbf16, #tpu.memory_space<vmem>>, vector<128x256xbf16>
    %cst_9 = arith.constant dense<0.000000e+00> : vector<8x256xf32>
    %7 = tpu.matmul %5, %6, %cst_9 {dimension_numbers = #tpu.dot_dimension_numbers<[1], [0], [0], [1], [0, 0, 1, 1], [], []>} : vector<8x128xbf16>, vector<128x256xbf16>, vector<8x256xf32> -> vector<8x256xf32>
    %c0_10 = arith.constant 0 : index
    %c0_11 = arith.constant 0 : index
    %8 = vector.load %arg3[%c0_10, %c0_11] : memref<1x256xf32, #tpu.memory_space<vmem>>, vector<1x256xf32>
    %9 = vector.broadcast %8 : vector<1x256xf32> to vector<8x256xf32>
    %10 = arith.addf %7, %9 : vector<8x256xf32>
    %cst_12 = arith.constant 0.000000e+00 : f32
    %11 = vector.broadcast %cst_12 : f32 to vector<8x256xf32>
    %12 = arith.maximumf %10, %11 : vector<8x256xf32>
    %13 = arith.truncf %12 : vector<8x256xf32> to vector<8x256xbf16>
    %c0_13 = arith.constant 0 : index
    %c0_14 = arith.constant 0 : index
    %14 = vector.load %arg4[%c0_13, %c0_14] : memref<256x512xbf16, #tpu.memory_space<vmem>>, vector<256x512xbf16>
    %cst_15 = arith.constant dense<0.000000e+00> : vector<8x512xf32>
    %15 = tpu.matmul %13, %14, %cst_15 {dimension_numbers = #tpu.dot_dimension_numbers<[1], [0], [0], [1], [0, 0, 1, 1], [], []>} : vector<8x256xbf16>, vector<256x512xbf16>, vector<8x512xf32> -> vector<8x512xf32>
    %c0_16 = arith.constant 0 : index
    %c0_17 = arith.constant 0 : index
    %16 = vector.load %arg5[%c0_16, %c0_17] : memref<1x512xf32, #tpu.memory_space<vmem>>, vector<1x512xf32>
    %17 = vector.broadcast %16 : vector<1x512xf32> to vector<8x512xf32>
    %18 = arith.addf %15, %17 : vector<8x512xf32>
    %cst_18 = arith.constant 0.000000e+00 : f32
    %19 = vector.broadcast %cst_18 : f32 to vector<8x512xf32>
    %20 = arith.maximumf %18, %19 : vector<8x512xf32>
    %21 = arith.truncf %20 : vector<8x512xf32> to vector<8x512xbf16>
    %c0_19 = arith.constant 0 : index
    %c0_20 = arith.constant 0 : index
    %22 = vector.load %arg6[%c0_19, %c0_20] : memref<512x128xbf16, #tpu.memory_space<vmem>>, vector<512x128xbf16>
    %cst_21 = arith.constant dense<0.000000e+00> : vector<8x128xf32>
    %23 = tpu.matmul %21, %22, %cst_21 {dimension_numbers = #tpu.dot_dimension_numbers<[1], [0], [0], [1], [0, 0, 1, 1], [], []>} : vector<8x512xbf16>, vector<512x128xbf16>, vector<8x128xf32> -> vector<8x128xf32>
    %c0_22 = arith.constant 0 : index
    %c0_23 = arith.constant 0 : index
    %24 = vector.load %arg7[%c0_22, %c0_23] : memref<1x128xf32, #tpu.memory_space<vmem>>, vector<1x128xf32>
    %25 = vector.broadcast %24 : vector<1x128xf32> to vector<8x128xf32>
    %26 = arith.addf %23, %25 : vector<8x128xf32>
    %cst_24 = arith.constant 0.000000e+00 : f32
    %27 = vector.broadcast %cst_24 : f32 to vector<8x128xf32>
    %28 = arith.maximumf %26, %27 : vector<8x128xf32>
    %29 = arith.truncf %28 : vector<8x128xf32> to vector<8x128xbf16>
    %c0_25 = arith.constant 0 : index
    %c0_26 = arith.constant 0 : index
    %30 = vector.load %arg8[%c0_25, %c0_26] : memref<128x128xbf16, #tpu.memory_space<vmem>>, vector<128x128xbf16>
    %cst_27 = arith.constant dense<0.000000e+00> : vector<8x128xf32>
    %31 = tpu.matmul %29, %30, %cst_27 {dimension_numbers = #tpu.dot_dimension_numbers<[1], [0], [0], [1], [0, 0, 1, 1], [], []>} : vector<8x128xbf16>, vector<128x128xbf16>, vector<8x128xf32> -> vector<8x128xf32>
    %c0_28 = arith.constant 0 : index
    %c0_29 = arith.constant 0 : index
    %32 = vector.load %arg9[%c0_28, %c0_29] : memref<1x128xf32, #tpu.memory_space<vmem>>, vector<1x128xf32>
    %33 = vector.broadcast %32 : vector<1x128xf32> to vector<8x128xf32>
    %34 = arith.addf %31, %33 : vector<8x128xf32>
    %cst_30 = arith.constant dense<0xFF800000> : vector<8xf32>
    %35 = vector.multi_reduction <maximumf>, %34, %cst_30 [1] : vector<8x128xf32> to vector<8xf32>
    %36 = vector.shape_cast %35 : vector<8xf32> to vector<8x1xf32>
    %37 = vector.broadcast %36 : vector<8x1xf32> to vector<8x128xf32>
    %38 = arith.subf %34, %37 : vector<8x128xf32>
    %39 = math.exp %38 : vector<8x128xf32>
    %cst_31 = arith.constant dense<0.000000e+00> : vector<8xf32>
    %40 = vector.multi_reduction <add>, %39, %cst_31 [1] : vector<8x128xf32> to vector<8xf32>
    %41 = vector.shape_cast %40 : vector<8xf32> to vector<8x1xf32>
    %42 = vector.broadcast %41 : vector<8x1xf32> to vector<8x128xf32>
    %43 = arith.divf %39, %42 : vector<8x128xf32>
    %44 = vector.extract_strided_slice %43 {offsets = [0, 0], sizes = [8, 13], strides = [1, 1]} : vector<8x128xf32> to vector<8x13xf32>
    %c0_32 = arith.constant 0 : index
    %c0_33 = arith.constant 0 : index
    %45 = vector.load %arg10[%c0_32, %c0_33] : memref<8x13xf32, #tpu.memory_space<vmem>>, vector<8x13xf32>
    tpu.vector_store %arg10[%c0_32, %c0_33], %44 {strides = array<i32>} : memref<8x13xf32, #tpu.memory_space<vmem>>, vector<8x13xf32>,
    return
  }
  func.func @transform_0(%arg0: i32) -> (i32, i32) {
    %c0_i32 = arith.constant 0 : i32
    %c0_i32_0 = arith.constant 0 : i32
    return %arg0, %c0_i32 : i32, i32
  }
  func.func @transform_1(%arg0: i32) -> (i32, i32) {
    %c0_i32 = arith.constant 0 : i32
    %c0_i32_0 = arith.constant 0 : i32
    %c0_i32_1 = arith.constant 0 : i32
    return %c0_i32, %c0_i32_0 : i32, i32
  }
  func.func @transform_2(%arg0: i32) -> (i32, i32) {
    %c0_i32 = arith.constant 0 : i32
    %c0_i32_0 = arith.constant 0 : i32
    %c0_i32_1 = arith.constant 0 : i32
    return %c0_i32, %c0_i32_0 : i32, i32
  }
  func.func @transform_3(%arg0: i32) -> (i32, i32) {
    %c0_i32 = arith.constant 0 : i32
    %c0_i32_0 = arith.constant 0 : i32
    %c0_i32_1 = arith.constant 0 : i32
    return %c0_i32, %c0_i32_0 : i32, i32
  }
  func.func @transform_4(%arg0: i32) -> (i32, i32) {
    %c0_i32 = arith.constant 0 : i32
    %c0_i32_0 = arith.constant 0 : i32
    %c0_i32_1 = arith.constant 0 : i32
    return %c0_i32, %c0_i32_0 : i32, i32
  }
  func.func @transform_5(%arg0: i32) -> (i32, i32) {
    %c0_i32 = arith.constant 0 : i32
    %c0_i32_0 = arith.constant 0 : i32
    %c0_i32_1 = arith.constant 0 : i32
    return %c0_i32, %c0_i32_0 : i32, i32
  }
  func.func @transform_6(%arg0: i32) -> (i32, i32) {
    %c0_i32 = arith.constant 0 : i32
    %c0_i32_0 = arith.constant 0 : i32
    %c0_i32_1 = arith.constant 0 : i32
    return %c0_i32, %c0_i32_0 : i32, i32
  }
  func.func @transform_7(%arg0: i32) -> (i32, i32) {
    %c0_i32 = arith.constant 0 : i32
    %c0_i32_0 = arith.constant 0 : i32
    %c0_i32_1 = arith.constant 0 : i32
    return %c0_i32, %c0_i32_0 : i32, i32
  }
  func.func @transform_8(%arg0: i32) -> (i32, i32) {
    %c0_i32 = arith.constant 0 : i32
    %c0_i32_0 = arith.constant 0 : i32
    %c0_i32_1 = arith.constant 0 : i32
    return %c0_i32, %c0_i32_0 : i32, i32
  }
  func.func @transform_9(%arg0: i32) -> (i32, i32) {
    %c0_i32 = arith.constant 0 : i32
    %c0_i32_0 = arith.constant 0 : i32
    return %arg0, %c0_i32 : i32, i32
  }
}

</mosaic_0001>

<bundles_post_ra>
// kernel: tpu_custom_call.1
= control target key start
LH: loop header
LB: loop body
LE: loop exit
PB: predicated region body
PF: predicated region fallthrough
CT: control target
= control target key end

     0   :  { %s2942_s0 = inlined_call_operand.hbm [shape: f32[16,68], index: 0, kind: input, shape index: {}]   ;;  %s2943_s1 = inlined_call_operand.hbm [shape: bf16[128,256], index: 1, kind: input, shape index: {}]   ;;  %s2944_s2 = inlined_call_operand.hbm [shape: f32[1,256], index: 2, kind: input, shape index: {}]   ;;  %s2945_s3 = inlined_call_operand.hbm [shape: bf16[256,512], index: 3, kind: input, shape index: {}]   ;;  %s2946_s4 = inlined_call_operand.hbm [shape: f32[1,512], index: 4, kind: input, shape index: {}]   ;;  %s2947_s5 = inlined_call_operand.hbm [shape: bf16[512,128], index: 5, kind: input, shape index: {}]   ;;  %s2948_s6 = inlined_call_operand.vmem [shape: f32[1,128], index: 6, kind: input, shape index: {}]   ;;  %s2949_s7 = inlined_call_operand.hbm [shape: bf16[128,128], index: 7, kind: input, shape index: {}]   ;;  %s2950_s8 = inlined_call_operand.vmem [shape: f32[1,128], index: 8, kind: input, shape index: {}]   ;;  %s2951_s9 = inlined_call_operand.hbm [shape: f32[16,13], index: 9, kind: output, shape index: {}]  }
   0x1   :  { %2952 = sst [smem:[#allocation21_spill]] %s2943_s1 }
   0x2   :  { %2953 = sst [smem:[#allocation22_spill]] %s2944_s2 }
   0x3   :  { %2954 = sst [smem:[#allocation23_spill]] %s2945_s3 }
   0x4   :  { %2955 = sst [smem:[#allocation24_spill]] %s2946_s4 }
   0x5   :  { %14 = vsyncpa [#allocation4], 0 }
   0x6   :  { %16 = vsyncpa [#allocation4 + $0x1], 0 }
   0x7   :  { %17 = vsyncpa [#allocation7], 0 }
   0x8   :  { %18 = vsyncpa [#allocation10], 0 }
   0x9   :  { %19 = vsyncpa [#allocation13], 0 }
   0xa   :  { %20 = vsyncpa [#allocation5], 0 }
   0xb   :  { %22 = vsyncpa [#allocation5 + $0x1], 0  ;;  %s2748_s30 = smov 0   ;;  %s2750_s10 = smov 0  }
   0xc   :  { %s2752_s11 = smov 0   ;;  %s2754_s12 = smov 0  }
   0xd LB: > { %s2956_s1 = sld [smem:[#allocation21_spill]]  ;;  %s2772_s16 = sadd.s32 4294967295, %s2683_s12   ;;  %s2683_s12 = sphi %s2754_s12, %s2971_s12   ;;  %s2679_s11 = sphi %s2752_s11, %s2970_s11   ;;  %s2675_s10 = sphi %s2750_s10, %s2969_s10   ;;  %s2671_s30 = sphi %s2748_s30, %s2968_s30  }
   0xe   : > { %p1652_p0 = scmp.ge.s32.totalorder %s2683_s12, 1  ;;  %p49_p1 = scmp.eq.s32.totalorder %s2772_s16, 0 }
   0xf   : > { %p253_p2 = scmp.lt.s32.totalorder %s2683_s12, 3  ;;  %s2685_s18 = smov [#allocation6]  }
  0x10   : > { %s266_s19 = sshll.u32 %s2685_s18, 4  ;;  %s2958_s3 = sld [smem:[#allocation23_spill]]  ;;  %s267_s19 = int_to_ptr.vmem [resolvable:$true] %s266_s19 }
  0x11   : > { %p2777_p3 = pnand %p1652_p0, %p253_p2  ;;  %s2686_s24 = smov [#allocation9]  }
  0x12   : > { %s292_s25 = sshll.u32 %s2686_s24, 4  ;;  %s2687_s26 = smov 128   ;;  %s293_s25 = int_to_ptr.vmem [resolvable:$true] %s292_s25 }
  0x13   : > { %s264_s15 = sshll.u32 %s2956_s1, 4  ;;  %p2303_p4 = pneg %p2777_p3  ;;  %s265_s15 = int_to_ptr.hbm [resolvable:$true] %s264_s15 }
  0x14   : > { %s2688_s27 = smov 8   ;;  %s2689_s28 = smov 256  }
  0x15   : > { %p2789_p6 = pnand %p2303_p4, %p49_p1  ;;  %s2690_s29 = smov 16  }
  0x16   : > { %s290_s22 = sshll.u32 %s2958_s3, 4  ;;  %s316_s18 = sshll.u32 %s2947_s5, 4  ;;  %s291_s22 = int_to_ptr.hbm [resolvable:$true] %s290_s22  ;;  %s317_s18 = int_to_ptr.hbm [resolvable:$true] %s316_s18 }
  0x17   : > { %2306 = dma.hbm_to_vmem [thread:$0]  (!%p2789_p6), %s265_s15, 2048, %s267_s19, [#allocation7], %s2687_s26, %s2687_s26, %s2688_s27  }
  0x18   : > { %2312 = dma.hbm_to_vmem [thread:$0]  (!%p2789_p6), %s291_s22, 8192, %s293_s25, [#allocation10], %s2689_s28, %s2689_s28, %s2690_s29  }
  0x19   : > { %s2691_s20 = smov [#allocation12]   ;;  %s2960_s2 = sld [smem:[#allocation22_spill]] }
  0x1a   : > { %s318_s21 = sshll.u32 %s2691_s20, 4  ;;  %s2692_s15 = smov 64   ;;  %s319_s21 = int_to_ptr.vmem [resolvable:$true] %s318_s21 }
  0x1b   : > { %s2693_s19 = smov 4   ;;  %s2694_s22 = smov [#allocation8]  }
  0x1c   : > { %2318 = dma.hbm_to_vmem [thread:$0]  (!%p2789_p6), %s317_s18, 4096, %s319_s21, [#allocation13], %s2692_s15, %s2692_s15, %s2693_s19  }
  0x1d   : > { %s281_s25 = sshll.u32 %s2694_s22, 4  ;;  %s2961_s4 = sld [smem:[#allocation24_spill]]  ;;  %s282_s25 = int_to_ptr.vmem [resolvable:$true] %s281_s25 }
  0x1e   : > { %s333_s13 = sshll.u32 %s2949_s7, 4  ;;  %s2695_s14 = smov [#allocation11]   ;;  %s334_s13 = int_to_ptr.hbm [resolvable:$true] %s333_s13 }
  0x1f   : > { %s279_s3 = sshll.u32 %s2960_s2, 4  ;;  %s307_s18 = sshll.u32 %s2695_s14, 4  ;;  %s280_s3 = int_to_ptr.hbm [resolvable:$true] %s279_s3  ;;  %s308_s18 = int_to_ptr.vmem [resolvable:$true] %s307_s18 }
  0x20   : > { %2309 = dma.hbm_to_vmem [thread:$0]  (!%p2789_p6), %s280_s3, 32, %s282_s25, [#allocation7]  }
  0x21   : > { %s2696_s20 = smov [#allocation14]   ;;  %s1651_s21 = sadd.s32 4294967294, %s2683_s12  }
  0x22   : > { %s335_s3 = sshll.u32 %s2696_s20, 4  ;;  %s2819_s24 = sadd.s32 1, %s2683_s12   ;;  %s336_s3 = int_to_ptr.vmem [resolvable:$true] %s335_s3 }
  0x23   : > { %s305_s28 = sshll.u32 %s2961_s4, 4  ;;  %s32_s22 = ssub.s32 %s2683_s12, %s2819_s24  ;;  %s306_s28 = int_to_ptr.hbm [resolvable:$true] %s305_s28 }
  0x24   : > { %2315 = dma.hbm_to_vmem [thread:$0]  (!%p2789_p6), %s306_s28, 64, %s308_s18, [#allocation10]  }
  0x25   : > { %2321 = dma.hbm_to_vmem [thread:$0]  (!%p2789_p6), %s334_s13, 1024, %s336_s3, [#allocation13], %s2692_s15, %s2692_s15, %s2693_s19  }
  0x26   : > { %s35_s25 = sadd.s32 1, %s2679_s11  ;;  %p33_p7 = scmp.eq.s32.totalorder %s32_s22, 0 }
  0x27   : > { %p42_p8 = scmp.ne.s32.totalorder %s2679_s11, %s2675_s10  ;;  %p43_p9 = scmp.eq.s32.totalorder %s2683_s12, 0 }
  0x28   : > { %p48_p10 = scmp.ne.s32.totalorder %s2675_s10, %s2671_s30  ;;  %p240_p13 = scmp.eq.s32.totalorder %s2772_s16, 1 }
  0x29   : > { %s2830_s26 = scalar_select %p33_p7, %s2679_s11, %s35_s25  }
  0x2a   : > { %p2832_p11 = por %p43_p9, %p42_p8  ;;  %p2838_p12 = por %p49_p1, %p48_p10 }
  0x2b   : > { %p246_p0 = scmp.eq.s32.totalorder %s1651_s21, 1  ;;  %p2336_p2 = scmp.lt.s32.totalorder %s2683_s12, 2 }
  0x2c   : > { %s352_s15 = sand.u32 1, %s2679_s11   ;;  %p2845_p4 = por %p240_p13, %p42_p8 }
  0x2d   : > { %p2849_p6 = por %p246_p0, %p48_p10  ;;  %s1660_s1 = sshll.u32 %s352_s15, 3 }
  0x2e   : > { %s1661_s29 = sshll.u32 %s2683_s12, 3  ;;  %s356_s20 = scalar_lea.vmem [#allocation3], %s1660_s1 }
  0x2f   : > { %s360_s18 = scalar_lea.hbm %s2942_s0, %s1661_s29  ;;  %s364_s3 = sshll.u32 %s356_s20, 4  ;;  %s365_s3 = int_to_ptr.vmem [resolvable:$true] %s364_s3 }
  0x30   : > { %s362_s22 = sshll.u32 %s360_s18, 4  ;;  %p2859_p7 = pnand %p2336_p2, %p2832_p11  ;;  %s363_s22 = int_to_ptr.hbm [resolvable:$true] %s362_s22 }
  0x31   : > { %s353_s25 = scalar_lea.sflag [#allocation4], %s352_s15  ;;  %s2575_s2 = sshra.s32 %s363_s22, 4  ;;  %s2576_s2 = int_to_ptr.hbm [resolvable:$true] %s2575_s2 }
  0x32   : > { %s2577_s4 = scalar_lea.hbm %s2576_s2, 8  ;;  %p2579_p9 = pneg %p2859_p7 }
  0x33   : > { %p2578_p8 = scmp.ne.s32.totalorder %s2576_s2, %s2577_s4  ;;  %s2582_s13 = scalar_lea.hbm %s2942_s0, 16 }
  0x34   : > { %p2583_p11 = scmp.lt.s32.totalorder %s2576_s2, %s2942_s0  ;;  %p2584_p0 = scmp.lt.s32.totalorder %s2582_s13, %s2577_s4 }
  0x35   : > { %p2580_p10 = pnand %p2579_p9, %p2578_p8 }
  0x36   : > { %p2585_p2 = por %p2584_p0, %p2583_p11 }
  0x37   : > { %p2581_p13 = pneg %p2580_p10 }
  0x39   : > { %p2586_p5 = pnand %p2585_p2, %p2581_p13 }
  0x3b   : > { %2589 = shalt.err (!%p2586_p5)
}
  0x3c   : > { %2325 = dma.hbm_to_vmem [thread:$0]  (!%p2859_p7), %s363_s22, 128, %s365_s3, %s353_s25  }
  0x3d   : > { %373 = sbr.rel (%p2777_p3) target bundleno = 929 (0x3a1), region = 56  ;;  %s2876_s15 = sand.u32 (!%p2777_p3), 1, %s2675_s10  }
  0x3e   : > { %s1663_s18 = sshll.u32 (!%p2777_p3), %s2876_s15, 3  ;;  %s376_s20 = scalar_lea.sflag (!%p2777_p3), [#allocation4], %s2876_s15 }
  0x3f   : > { %s2882_s2 = scalar_lea.vmem (!%p2777_p3), [#allocation3], %s1663_s18 }
  0x42   : > { %2650 = dma.done.wait (%p2838_p12), %s376_s20, 128  }
  0x43   : > { %2652 = vsyncadd (%p2838_p12), %s376_s20, 4294967168 }
  0x44   : > { %2654 = dma.done.wait (%p49_p1), [#allocation7], 2080  }
  0x45   : > { %2656 = vsyncadd (%p49_p1), [#allocation7], 4294965216 }
  0x46   : > { %2658 = dma.done.wait (%p49_p1), [#allocation10], 8256  }
  0x47   : > { %2660 = vsyncadd (%p49_p1), [#allocation10], 4294959040 }
  0x48   : > { %2662 = dma.done.wait (%p49_p1), [#allocation13], 5120  }
  0x49   : > { %2664 = vsyncadd (%p49_p1), [#allocation13], 4294962176  ;;  %v2697_v0 = vmov 0.0   ;;  %v1729_v1 = vld [vmem:[#allocation6 + $0x70] sm:$0xf]  ;;  %vm447_vm0 = vcmask 556032  }
  0x4a   : > { %445 = vst [vmem:[#allocation2] sm:$0xff] %v2697_v0  ;;  %v2170_v2 = vld [vmem:[#allocation6 + $0x74] sm:$0xf0]  ;;  %v2169_v3 = vld [vmem:[#allocation6 + $0x74] sm:$0xf]  ;;  %s2152_s22 = sshll.u32 %s2772_s16, 3 }
  0x4b   : > { %v1730_v4 = vor.u32 %v2170_v2, %v1729_v1  ;;  %v1731_v5 = vld [vmem:[#allocation6 + $0x78] sm:$0xf0]  ;;  %v1721_v6 = vld [vmem:[#allocation6 + $0x60] sm:$0xf]  ;;  %v2168_v7 = vld [vmem:[#allocation6 + $0x64] sm:$0xf0]  ;;  %s1519_s1 = scalar_lea.hbm %s2951_s9, %s2152_s22 }
  0x4c   : > { %v1734_v8 = vor.u32 %v2169_v3, %v1731_v5  ;;  %v2167_v9 = vld [vmem:[#allocation6 + $0x64] sm:$0xf]  ;;  %v1723_v10 = vld [vmem:[#allocation6 + $0x68] sm:$0xf0]  ;;  %v1722_v11 = vor.u32 %v2168_v7, %v1721_v6  ;;  %v1713_v13 = vld [vmem:[#allocation6 + $0x50] sm:$0xf] }
  0x4d   : > { %553 = vmatpush.bf16.msra.mxu0 %v1730_v4  ;;  %v1726_v12 = vor.u32 %v2167_v9, %v1723_v10  ;;  %v2166_v14 = vld [vmem:[#allocation6 + $0x54] sm:$0xf0]  ;;  %v2165_v15 = vld [vmem:[#allocation6 + $0x54] sm:$0xf]  ;;  %v1715_v16 = vld [vmem:[#allocation6 + $0x58] sm:$0xf0] }
  0x4e   : > { %566 = vmatpush.bf16.msra.mxu1 %v1734_v8  ;;  %v1714_v17 = vor.u32 %v2166_v14, %v1713_v13  ;;  %v1718_v18 = vor.u32 %v2165_v15, %v1715_v16  ;;  %v1705_v19 = vld [vmem:[#allocation6 + $0x40] sm:$0xf]  ;;  %v2164_v20 = vld [vmem:[#allocation6 + $0x44] sm:$0xf0]  ;;  %v2163_v21 = vld [vmem:[#allocation6 + $0x44] sm:$0xf] }
  0x4f   : > { %v1707_v22 = vld [vmem:[#allocation6 + $0x48] sm:$0xf0]  ;;  %v1697_v23 = vld [vmem:[#allocation6 + $0x30] sm:$0xf]  ;;  %v1706_v25 = vor.u32 %v2164_v20, %v1705_v19  ;;  %v1849_v26 = vld [vmem:[#allocation9 + $0xe0] sm:$0xf] }
  0x50   : > { %v446_v24 = vld [vmem:[%s2882_s2] sm:$0xff]  ;;  %v1710_v28 = vor.u32 %v2163_v21, %v1707_v22  ;;  %v1977_v31 = vld [vmem:[#allocation9 + $0x1e0] sm:$0xf]  ;;  %v2160_v41 = vld [vmem:[#allocation6 + $0x24] sm:$0xf0]  ;;  %s444_s29 = scalar_lea.vmem [#allocation15], %s1663_s18 }
  0x51   : > { %554 = vmatpush.bf16.msra.mxu0 %v1722_v11  ;;  %448 = vst.msk [vmem:[#allocation2] sm:$0xff] %vm447_vm0, %v446_v24  ;;  %v2201_v27 = vld [vmem:[#allocation9 + $0xec] sm:$0xf0]  ;;  %v2162_v29 = vld [vmem:[#allocation6 + $0x34] sm:$0xf0]  ;;  %s1521_s13 = sshll.u32 %s444_s29, 4  ;;  %s1522_s13 = int_to_ptr.vmem [resolvable:$true] %s1521_s13 }
  0x52   : > { %567 = vmatpush.bf16.msra.mxu1 %v1726_v12  ;;  %v1850_v30 = vor.u32 %v2201_v27, %v1849_v26  ;;  %v2233_v32 = vld [vmem:[#allocation9 + $0x1ec] sm:$0xf0]  ;;  %v1699_v34 = vld [vmem:[#allocation6 + $0x38] sm:$0xf0]  ;;  %v1833_v36 = vld [vmem:[#allocation9 + $0xc0] sm:$0xf]  ;;  %v1698_v39 = vor.u32 %v2162_v29, %v1697_v23 }
  0x53   : > { %v2161_v33 = vld [vmem:[#allocation6 + $0x34] sm:$0xf]  ;;  %v1978_v35 = vor.u32 %v2233_v32, %v1977_v31  ;;  %v1961_v38 = vld [vmem:[#allocation9 + $0x1c0] sm:$0xf]  ;;  %v1691_v46 = vld [vmem:[#allocation6 + $0x28] sm:$0xf0] }
  0x54   : > { %977 = vmatpush.bf16.msra.mxu2 %v1850_v30  ;;  %v2197_v37 = vld [vmem:[#allocation9 + $0xcc] sm:$0xf0]  ;;  %v1689_v40 = vld [vmem:[#allocation6 + $0x20] sm:$0xf]  ;;  %v1702_v44 = vor.u32 %v2161_v33, %v1699_v34  ;;  %v2159_v45 = vld [vmem:[#allocation6 + $0x24] sm:$0xf] }
  0x55   : > { %555 = vmatpush.bf16.msra.mxu0 %v1714_v17  ;;  %990 = vmatpush.bf16.msra.mxu3 %v1978_v35  ;;  %v1834_v42 = vor.u32 %v2197_v37, %v1833_v36  ;;  %v2229_v43 = vld [vmem:[#allocation9 + $0x1cc] sm:$0xf0]  ;;  %v1817_v48 = vld [vmem:[#allocation9 + $0xa0] sm:$0xf]  ;;  %v1690_v53 = vor.u32 %v2160_v41, %v1689_v40  ;;  %v2158_v55 = vld [vmem:[#allocation6 + $0x14] sm:$0xf0]  ;;  %v1694_v58 = vor.u32 %v2159_v45, %v1691_v46 }
  0x56   : > { %568 = vmatpush.bf16.msra.mxu1 %v1718_v18  ;;  %v1962_v47 = vor.u32 %v2229_v43, %v1961_v38  ;;  %v2193_v49 = vld [vmem:[#allocation9 + $0xac] sm:$0xf0]  ;;  %v1945_v50 = vld [vmem:[#allocation9 + $0x1a0] sm:$0xf]  ;;  %v1683_v63 = vld [vmem:[#allocation6 + $0x18] sm:$0xf0] }
  0x57   : > { %v2225_v51 = vld [vmem:[#allocation9 + $0x1ac] sm:$0xf0]  ;;  %v1818_v52 = vor.u32 %v2193_v49, %v1817_v48  ;;  %v1801_v57 = vld [vmem:[#allocation9 + $0x80] sm:$0xf]  ;;  %v2156_v3 = vld [vmem:[#allocation6 + $0x4] sm:$0xf0] }
  0x58   : > { %978 = vmatpush.bf16.msra.mxu2 %v1834_v42  ;;  %v1681_v54 = vld [vmem:[#allocation6 + $0x10] sm:$0xf]  ;;  %v1946_v56 = vor.u32 %v2225_v51, %v1945_v50  ;;  %v1929_v60 = vld [vmem:[#allocation9 + $0x180] sm:$0xf]  ;;  %v2157_v62 = vld [vmem:[#allocation6 + $0x14] sm:$0xf] }
  0x59   : > { %556 = vmatpush.bf16.msra.mxu0 %v1706_v25  ;;  %991 = vmatpush.bf16.msra.mxu3 %v1962_v47  ;;  %v2189_v59 = vld [vmem:[#allocation9 + $0x8c] sm:$0xf0]  ;;  %v1673_v0 = vld [vmem:[#allocation6] sm:$0xf]  ;;  %v1682_v2 = vor.u32 %v2158_v55, %v1681_v54  ;;  %v1686_v7 = vor.u32 %v2157_v62, %v1683_v63  ;;  %v2155_v8 = vld [vmem:[#allocation6 + $0x4] sm:$0xf] }
  0x5a   : > { %569 = vmatpush.bf16.msra.mxu1 %v1710_v28  ;;  %v2221_v61 = vld [vmem:[#allocation9 + $0x18c] sm:$0xf0]  ;;  %v1802_v1 = vor.u32 %v2189_v59, %v1801_v57  ;;  %v1785_v5 = vld [vmem:[#allocation9 + $0x60] sm:$0xf]  ;;  %v1675_v11 = vld [vmem:[#allocation6 + $0x8] sm:$0xf0]  ;;  %v1674_v17 = vor.u32 %v2156_v3, %v1673_v0 }
  0x5b   : > { %v1930_v4 = vor.u32 %v2221_v61, %v1929_v60  ;;  %v2185_v6 = vld [vmem:[#allocation9 + $0x6c] sm:$0xf0]  ;;  %v1913_v9 = vld [vmem:[#allocation9 + $0x160] sm:$0xf]  ;;  %v2199_v12 = vld [vmem:[#allocation9 + $0xe4] sm:$0xf]  ;;  %v1678_v22 = vor.u32 %v2155_v8, %v1675_v11 }
  0x5c   : > { %979 = vmatpush.bf16.msra.mxu2 %v1818_v52  ;;  %v2217_v10 = vld [vmem:[#allocation9 + $0x16c] sm:$0xf0]  ;;  %v1851_v13 = vld [vmem:[#allocation9 + $0xf0] sm:$0xf0]  ;;  %v2231_v14 = vld [vmem:[#allocation9 + $0x1e4] sm:$0xf]  ;;  %v1786_v16 = vor.u32 %v2185_v6, %v1785_v5 }
  0x5d   : > { %557 = vmatpush.bf16.msra.mxu0 %v1698_v39  ;;  %992 = vmatpush.bf16.msra.mxu3 %v1946_v56  ;;  %v1979_v15 = vld [vmem:[#allocation9 + $0x1f0] sm:$0xf0]  ;;  %v449_v18 = vld [vmem:[#allocation2] sm:$0xff]  ;;  %v1914_v19 = vor.u32 %v2217_v10, %v1913_v9  ;;  %v1769_v20 = vld [vmem:[#allocation9 + $0x40] sm:$0xf]  ;;  %v1854_v23 = vor.u32 %v2199_v12, %v1851_v13  ;;  %s1523_s14 = sshll.u32 %s1519_s1, 4  ;;  %s1524_s14 = int_to_ptr.hbm [resolvable:$true] %s1523_s14 }
  0x5e   : > { %570 = vmatpush.bf16.msra.mxu1 %v1702_v44  ;;  %v2181_v21 = vld [vmem:[#allocation9 + $0x4c] sm:$0xf0]  ;;  %v1897_v24 = vld [vmem:[#allocation9 + $0x140] sm:$0xf]  ;;  %v1982_v26 = vor.u32 %v2231_v14, %v1979_v15  ;;  %v2195_v27 = vld [vmem:[#allocation9 + $0xc4] sm:$0xf]  ;;  %v450_v29 = vpack.c.bf16 %v449_v18, %v449_v18 }
  0x5f   : > { %v2213_v25 = vld [vmem:[#allocation9 + $0x14c] sm:$0xf0]  ;;  %v1835_v28 = vld [vmem:[#allocation9 + $0xd0] sm:$0xf0]  ;;  %v2227_v30 = vld [vmem:[#allocation9 + $0x1c4] sm:$0xf]  ;;  %v1770_v32 = vor.u32 %v2181_v21, %v1769_v20 }
  0x60   : > { %980 = vmatpush.bf16.msra.mxu2 %v1802_v1  ;;  %v1963_v31 = vld [vmem:[#allocation9 + $0x1d0] sm:$0xf0]  ;;  %v1898_v33 = vor.u32 %v2213_v25, %v1897_v24  ;;  %v1753_v34 = vld [vmem:[#allocation9 + $0x20] sm:$0xf]  ;;  %v2177_v35 = vld [vmem:[#allocation9 + $0x2c] sm:$0xf0]  ;;  %v1838_v36 = vor.u32 %v2195_v27, %v1835_v28 }
  0x61   : > { %558 = vmatpush.bf16.msra.mxu0 %v1690_v53  ;;  %993 = vmatpush.bf16.msra.mxu3 %v1930_v4  ;;  %v1881_v37 = vld [vmem:[#allocation9 + $0x120] sm:$0xf]  ;;  %v2209_v38 = vld [vmem:[#allocation9 + $0x12c] sm:$0xf0]  ;;  %v1966_v39 = vor.u32 %v2227_v30, %v1963_v31  ;;  %v2191_v40 = vld [vmem:[#allocation9 + $0xa4] sm:$0xf]  ;;  %v1754_v44 = vor.u32 %v2177_v35, %v1753_v34 }
  0x62   : > { %571 = vmatpush.bf16.msra.mxu1 %v1694_v58  ;;  %v1819_v41 = vld [vmem:[#allocation9 + $0xb0] sm:$0xf0]  ;;  %v2223_v42 = vld [vmem:[#allocation9 + $0x1a4] sm:$0xf]  ;;  %v1882_v46 = vor.u32 %v2209_v38, %v1881_v37  ;;  %v1737_v47 = vld [vmem:[#allocation9] sm:$0xf] }
  0x63   : > { %v1947_v43 = vld [vmem:[#allocation9 + $0x1b0] sm:$0xf0]  ;;  %v2187_v45 = vld [vmem:[#allocation9 + $0x84] sm:$0xf]  ;;  %v2173_v48 = vld [vmem:[#allocation9 + $0xc] sm:$0xf0]  ;;  %v1822_v50 = vor.u32 %v2191_v40, %v1819_v41 }
  0x64   : > { %981 = vmatpush.bf16.msra.mxu2 %v1786_v16  ;;  %v1865_v49 = vld [vmem:[#allocation9 + $0x100] sm:$0xf]  ;;  %v2205_v51 = vld [vmem:[#allocation9 + $0x10c] sm:$0xf0]  ;;  %v1857_v52 = vld [vmem:[#allocation9 + $0xe8] sm:$0xf]  ;;  %v1950_v54 = vor.u32 %v2223_v42, %v1947_v43  ;;  %v1738_v60 = vor.u32 %v2173_v48, %v1737_v47 }
  0x65   : > { %559 = vmatpush.bf16.msra.mxu0 %v1682_v2  ;;  %994 = vmatpush.bf16.msra.mxu3 %v1914_v19  ;;  %v2202_v53 = vld [vmem:[#allocation9 + $0xf4] sm:$0xf0]  ;;  %v1803_v55 = vld [vmem:[#allocation9 + $0x90] sm:$0xf0]  ;;  %v1985_v56 = vld [vmem:[#allocation9 + $0x1e8] sm:$0xf]  ;;  %v1866_v61 = vor.u32 %v2205_v51, %v1865_v49 }
  0x66   : > { %572 = vmatpush.bf16.msra.mxu1 %v1686_v7  ;;  %v2234_v57 = vld [vmem:[#allocation9 + $0x1f4] sm:$0xf0]  ;;  %v2219_v58 = vld [vmem:[#allocation9 + $0x184] sm:$0xf]  ;;  %v1931_v59 = vld [vmem:[#allocation9 + $0x190] sm:$0xf0]  ;;  %v1858_v62 = vor.u32 %v2202_v53, %v1857_v52  ;;  %v1806_v63 = vor.u32 %v2187_v45, %v1803_v55 }
  0x67   : > { %v2183_v0 = vld [vmem:[#allocation9 + $0x64] sm:$0xf]  ;;  %v1986_v1 = vor.u32 %v2234_v57, %v1985_v56  ;;  %v1841_v2 = vld [vmem:[#allocation9 + $0xc8] sm:$0xf]  ;;  %v2198_v3 = vld [vmem:[#allocation9 + $0xd4] sm:$0xf0]  ;;  %v1934_v4 = vor.u32 %v2219_v58, %v1931_v59 }
  0x68   : > { %982 = vmatpush.bf16.msra.mxu2 %v1770_v32  ;;  %v1787_v5 = vld [vmem:[#allocation9 + $0x70] sm:$0xf0]  ;;  %v1969_v6 = vld [vmem:[#allocation9 + $0x1c8] sm:$0xf]  ;;  %v2230_v7 = vld [vmem:[#allocation9 + $0x1d4] sm:$0xf0]  ;;  %v1842_v10 = vor.u32 %v2198_v3, %v1841_v2 }
  0x69   : > { %560 = vmatpush.bf16.msra.mxu0 %v1674_v17  ;;  %995 = vmatpush.bf16.msra.mxu3 %v1898_v33  ;;  %v2215_v8 = vld [vmem:[#allocation9 + $0x164] sm:$0xf]  ;;  %v1915_v9 = vld [vmem:[#allocation9 + $0x170] sm:$0xf0]  ;;  %v1790_v11 = vor.u32 %v2183_v0, %v1787_v5  ;;  %v1970_v12 = vor.u32 %v2230_v7, %v1969_v6  ;;  %v2200_v30 = vld [vmem:[#allocation9 + $0xec] sm:$0xf] }
  0x6a   : > { %573 = vmatpush.bf16.msra.mxu1 %v1678_v22  ;;  %v1918_v13 = vor.u32 %v2215_v8, %v1915_v9  ;;  %v2179_v14 = vld [vmem:[#allocation9 + $0x44] sm:$0xf]  ;;  %v1771_v15 = vld [vmem:[#allocation9 + $0x50] sm:$0xf0]  ;;  %v1859_v31 = vld [vmem:[#allocation9 + $0xf8] sm:$0xf0] }
  0x6b   : > { %v2211_v16 = vld [vmem:[#allocation9 + $0x144] sm:$0xf]  ;;  %v1899_v17 = vld [vmem:[#allocation9 + $0x150] sm:$0xf0]  ;;  %v1774_v18 = vor.u32 %v2179_v14, %v1771_v15  ;;  %v2232_v32 = vld [vmem:[#allocation9 + $0x1ec] sm:$0xf] }
  0x6c   : > { %561 = vmatmul.bf16.vlgmr.msra.gmra.mxu0 %v450_v29  ;;  %983 = vmatpush.bf16.msra.mxu2 %v1754_v44  ;;  %v1902_v19 = vor.u32 %v2211_v16, %v1899_v17  ;;  %v2175_v20 = vld [vmem:[#allocation9 + $0x24] sm:$0xf]  ;;  %v1755_v21 = vld [vmem:[#allocation9 + $0x30] sm:$0xf0]  ;;  %v1987_v33 = vld [vmem:[#allocation9 + $0x1f8] sm:$0xf0] }
  0x6d   : > { %1003 = vmatpush.bf16.msrb.mxu0 %v1854_v23  ;;  %574 = vmatmul.bf16.vlgmr.msra.gmra.mxu1 %v450_v29  ;;  %v2207_v22 = vld [vmem:[#allocation9 + $0x124] sm:$0xf]  ;;  %v1883_v23 = vld [vmem:[#allocation9 + $0x130] sm:$0xf0]  ;;  %v1758_v24 = vor.u32 %v2175_v20, %v1755_v21  ;;  %v1990_v37 = vor.u32 %v2232_v32, %v1987_v33  ;;  %v2196_v38 = vld [vmem:[#allocation9 + $0xcc] sm:$0xf] }
  0x6e   : > { %1016 = vmatpush.bf16.msrb.mxu1 %v1982_v26  ;;  %996 = vmatpush.bf16.msra.mxu3 %v1882_v46  ;;  %v1886_v25 = vor.u32 %v2207_v22, %v1883_v23  ;;  %v2171_v26 = vld [vmem:[#allocation9 + $0x4] sm:$0xf]  ;;  %v1739_v27 = vld [vmem:[#allocation9 + $0x10] sm:$0xf0]  ;;  %v2228_v40 = vld [vmem:[#allocation9 + $0x1cc] sm:$0xf] }
  0x6f   : > { %v2203_v28 = vld [vmem:[#allocation9 + $0x104] sm:$0xf]  ;;  %v1867_v29 = vld [vmem:[#allocation9 + $0x110] sm:$0xf0]  ;;  %v1742_v34 = vor.u32 %v2171_v26, %v1739_v27  ;;  %v1971_v41 = vld [vmem:[#allocation9 + $0x1d8] sm:$0xf0] }
  0x70   : > { %984 = vmatpush.bf16.msra.mxu2 %v1738_v60  ;;  %v1870_v35 = vor.u32 %v2203_v28, %v1867_v29  ;;  %v1974_v43 = vor.u32 %v2228_v40, %v1971_v41  ;;  %v1825_v44 = vld [vmem:[#allocation9 + $0xa8] sm:$0xf]  ;;  %v2194_v45 = vld [vmem:[#allocation9 + $0xb4] sm:$0xf0]  ;;  %v2192_v49 = vld [vmem:[#allocation9 + $0xac] sm:$0xf] }
  0x71   : > { %1004 = vmatpush.bf16.msrb.mxu0 %v1838_v36  ;;  %v1862_v36 = vor.u32 %v2200_v30, %v1859_v31  ;;  %v1953_v46 = vld [vmem:[#allocation9 + $0x1a8] sm:$0xf]  ;;  %v1826_v47 = vor.u32 %v2194_v45, %v1825_v44  ;;  %v2226_v48 = vld [vmem:[#allocation9 + $0x1b4] sm:$0xf0]  ;;  %v2224_v53 = vld [vmem:[#allocation9 + $0x1ac] sm:$0xf] }
  0x72   : > { %1017 = vmatpush.bf16.msrb.mxu1 %v1966_v39  ;;  %997 = vmatpush.bf16.msra.mxu3 %v1866_v61  ;;  %v1843_v39 = vld [vmem:[#allocation9 + $0xd8] sm:$0xf0]  ;;  %v1954_v51 = vor.u32 %v2226_v48, %v1953_v46  ;;  %v1809_v56 = vld [vmem:[#allocation9 + $0x88] sm:$0xf]  ;;  %v2190_v57 = vld [vmem:[#allocation9 + $0x94] sm:$0xf0] }
  0x73   : > { %v1846_v42 = vor.u32 %v2196_v38, %v1843_v39  ;;  %v1937_v58 = vld [vmem:[#allocation9 + $0x188] sm:$0xf]  ;;  %v1810_v59 = vor.u32 %v2190_v57, %v1809_v56  ;;  %v2222_v60 = vld [vmem:[#allocation9 + $0x194] sm:$0xf0]  ;;  %v2188_v61 = vld [vmem:[#allocation9 + $0x8c] sm:$0xf] }
  0x74   : > { %1029 = vmatpush.bf16.msrb.mxu2 %v1858_v62  ;;  %v1811_v62 = vld [vmem:[#allocation9 + $0x98] sm:$0xf0]  ;;  %v2186_v5 = vld [vmem:[#allocation9 + $0x74] sm:$0xf0]  ;;  %v1921_v6 = vld [vmem:[#allocation9 + $0x168] sm:$0xf] }
  0x75   : > { %1005 = vmatpush.bf16.msrb.mxu0 %v1822_v50  ;;  %v1827_v50 = vld [vmem:[#allocation9 + $0xb8] sm:$0xf0]  ;;  %v1814_v0 = vor.u32 %v2188_v61, %v1811_v62  ;;  %v2218_v8 = vld [vmem:[#allocation9 + $0x174] sm:$0xf0]  ;;  %v2184_v9 = vld [vmem:[#allocation9 + $0x6c] sm:$0xf] }
  0x76   : > { %1018 = vmatpush.bf16.msrb.mxu1 %v1950_v54  ;;  %1042 = vmatpush.bf16.msrb.mxu3 %v1986_v1  ;;  %v1830_v52 = vor.u32 %v2192_v49, %v1827_v50  ;;  %v1955_v54 = vld [vmem:[#allocation9 + $0x1b8] sm:$0xf0]  ;;  %v2220_v1 = vld [vmem:[#allocation9 + $0x18c] sm:$0xf]  ;;  %v1777_v16 = vld [vmem:[#allocation9 + $0x48] sm:$0xf] }
  0x77   : > { %v1958_v55 = vor.u32 %v2224_v53, %v1955_v54  ;;  %v1939_v2 = vld [vmem:[#allocation9 + $0x198] sm:$0xf0]  ;;  %v2182_v17 = vld [vmem:[#allocation9 + $0x54] sm:$0xf0]  ;;  %v2180_v21 = vld [vmem:[#allocation9 + $0x4c] sm:$0xf] }
  0x78   : > { %1030 = vmatpush.bf16.msrb.mxu2 %v1842_v10  ;;  %v1942_v3 = vor.u32 %v2220_v1, %v1939_v2  ;;  %v1795_v10 = vld [vmem:[#allocation9 + $0x78] sm:$0xf0]  ;;  %v2214_v20 = vld [vmem:[#allocation9 + $0x154] sm:$0xf0]  ;;  %v1761_v27 = vld [vmem:[#allocation9 + $0x28] sm:$0xf] }
  0x79   : > { %1006 = vmatpush.bf16.msrb.mxu0 %v1806_v63  ;;  %v1938_v63 = vor.u32 %v2222_v60, %v1937_v58  ;;  %v1923_v14 = vld [vmem:[#allocation9 + $0x178] sm:$0xf0]  ;;  %v2178_v29 = vld [vmem:[#allocation9 + $0x34] sm:$0xf0]  ;;  %v1889_v30 = vld [vmem:[#allocation9 + $0x128] sm:$0xf] }
  0x7a   : > { %1019 = vmatpush.bf16.msrb.mxu1 %v1934_v4  ;;  %1043 = vmatpush.bf16.msrb.mxu3 %v1970_v12  ;;  %v1793_v4 = vld [vmem:[#allocation9 + $0x68] sm:$0xf]  ;;  %v1798_v12 = vor.u32 %v2184_v9, %v1795_v10  ;;  %v1779_v22 = vld [vmem:[#allocation9 + $0x58] sm:$0xf0]  ;;  %v2210_v31 = vld [vmem:[#allocation9 + $0x134] sm:$0xf0]  ;;  %v1762_v32 = vor.u32 %v2178_v29, %v1761_v27 }
  0x7b   : > { %v1794_v7 = vor.u32 %v2186_v5, %v1793_v4  ;;  %v1907_v26 = vld [vmem:[#allocation9 + $0x158] sm:$0xf0]  ;;  %v2176_v33 = vld [vmem:[#allocation9 + $0x2c] sm:$0xf]  ;;  %v1745_v39 = vld [vmem:[#allocation9 + $0x8] sm:$0xf] }
  0x7c   : > { %1031 = vmatpush.bf16.msrb.mxu2 %v1826_v47  ;;  %v1891_v38 = vld [vmem:[#allocation9 + $0x138] sm:$0xf0]  ;;  %v2174_v40 = vld [vmem:[#allocation9 + $0x14] sm:$0xf0]  ;;  %v2172_v44 = vld [vmem:[#allocation9 + $0xc] sm:$0xf] }
  0x7d   : > { %1007 = vmatpush.bf16.msrb.mxu0 %v1790_v11  ;;  %v1922_v11 = vor.u32 %v2218_v8, %v1921_v6  ;;  %v1747_v45 = vld [vmem:[#allocation9 + $0x18] sm:$0xf0]  ;;  %v2204_v46 = vld [vmem:[#allocation9 + $0x10c] sm:$0xf]  ;;  %v1746_v48 = vor.u32 %v2174_v40, %v1745_v39  ;;  %v2249_v4 = vld [vmem:[#allocation12 + $0x70] sm:$0xff]  ;;  %vm1506_vm5 = vcmask 105472  }
  0x7e   : > { %1020 = vmatpush.bf16.msrb.mxu1 %v1918_v13  ;;  %1044 = vmatpush.bf16.msrb.mxu3 %v1954_v51  ;;  %v2216_v13 = vld [vmem:[#allocation9 + $0x16c] sm:$0xf]  ;;  %v1875_v47 = vld [vmem:[#allocation9 + $0x118] sm:$0xf0]  ;;  %v1750_v50 = vor.u32 %v2172_v44, %v1747_v45  ;;  %v2241_v5 = vld [vmem:[#allocation12 + $0x30] sm:$0xff]  ;;  %s1509_s16 = scalar_lea.sflag [#allocation5], %s2876_s15 }
  0x7f   : > { %v1926_v15 = vor.u32 %v2216_v13, %v1923_v14  ;;  %v1878_v51 = vor.u32 %v2204_v46, %v1875_v47  ;;  %v2250_v62 = vld [vmem:[#allocation12 + $0x78] sm:$0xff]  ;;  %v2265_v6 = vld [vmem:[#allocation12 + $0xf0] sm:$0xff]  ;;  %v2240_v8 = vld [vmem:[#allocation12 + $0x28] sm:$0xff]  ;;  %s2619_s27 = sshra.s32 %s1524_s14, 4  ;;  %s2625_s4 = scalar_lea.hbm %s2951_s9, 16  ;;  %s2620_s27 = int_to_ptr.hbm [resolvable:$true] %s2619_s27 }
  0x80   : > { %1032 = vmatpush.bf16.msrb.mxu2 %v1810_v59  ;;  %v2266_v1 = vld [vmem:[#allocation12 + $0xf8] sm:$0xff]  ;;  %v2247_v9 = vld [vmem:[#allocation12 + $0x60] sm:$0xff]  ;;  %v2253_v29 = vld [vmem:[#allocation12 + $0x90] sm:$0xff]  ;;  %s2621_s20 = scalar_lea.hbm %s2620_s27, 8  ;;  %p2626_p12 = scmp.lt.s32.totalorder %s2620_s27, %s2951_s9 }
  0x81   : > { %1008 = vmatpush.bf16.msrb.mxu0 %v1774_v18  ;;  %v1905_v18 = vld [vmem:[#allocation9 + $0x148] sm:$0xf]  ;;  %v2238_v13 = vld [vmem:[#allocation12 + $0x18] sm:$0xff]  ;;  %v2273_v39 = vld [vmem:[#allocation14 + $0x30] sm:$0xff]  ;;  %p2622_p1 = scmp.ne.s32.totalorder %s2620_s27, %s2621_s20  ;;  %p2627_p7 = scmp.lt.s32.totalorder %s2625_s4, %s2621_s20 }
  0x82   : > { %1021 = vmatpush.bf16.msrb.mxu1 %v1902_v19  ;;  %1045 = vmatpush.bf16.msrb.mxu3 %v1938_v63  ;;  %v1778_v19 = vor.u32 %v2182_v17, %v1777_v16  ;;  %v1906_v23 = vor.u32 %v2214_v20, %v1905_v18  ;;  %v2242_v63 = vld [vmem:[#allocation12 + $0x38] sm:$0xff]  ;;  %v2239_v10 = vld [vmem:[#allocation12 + $0x20] sm:$0xff]  ;;  %v2264_v16 = vld [vmem:[#allocation12 + $0xe8] sm:$0xff] }
  0x83   : > { %v2258_v14 = vld [vmem:[#allocation12 + $0xb8] sm:$0xff]  ;;  %v2237_v17 = vld [vmem:[#allocation12 + $0x10] sm:$0xff]  ;;  %v2263_v20 = vld [vmem:[#allocation12 + $0xe0] sm:$0xff]  ;;  %p2623_p3 = pnand %p2622_p1, %p2845_p4  ;;  %p2628_p8 = por %p2627_p7, %p2626_p12 }
  0x84   : > { %1033 = vmatpush.bf16.msrb.mxu2 %v1794_v7  ;;  %v2248_v7 = vld [vmem:[#allocation12 + $0x68] sm:$0xff]  ;;  %v2257_v18 = vld [vmem:[#allocation12 + $0xb0] sm:$0xff]  ;;  %v2254_v27 = vld [vmem:[#allocation12 + $0x98] sm:$0xff] }
  0x85   : > { %1009 = vmatpush.bf16.msrb.mxu0 %v1758_v24  ;;  %v1782_v24 = vor.u32 %v2180_v21, %v1779_v22  ;;  %v2236_v21 = vld [vmem:[#allocation12 + $0x8] sm:$0xff]  ;;  %p2624_p5 = pneg %p2623_p3 }
  0x86   : > { %1022 = vmatpush.bf16.msrb.mxu1 %v1886_v25  ;;  %1046 = vmatpush.bf16.msrb.mxu3 %v1922_v11  ;;  %v2212_v25 = vld [vmem:[#allocation9 + $0x14c] sm:$0xf]  ;;  %v2246_v11 = vld [vmem:[#allocation12 + $0x58] sm:$0xff] }
  0x87   : > { %v1910_v28 = vor.u32 %v2212_v25, %v1907_v26  ;;  %v2256_v22 = vld [vmem:[#allocation12 + $0xa8] sm:$0xff]  ;;  %v2255_v25 = vld [vmem:[#allocation12 + $0xa0] sm:$0xff]  ;;  %v2261_v26 = vld [vmem:[#allocation12 + $0xd0] sm:$0xff]  ;;  %p2629_p9 = pnand %p2628_p8, %p2624_p5 }
  0x88   : > { %1034 = vmatpush.bf16.msrb.mxu2 %v1778_v19  ;;  %v2243_v19 = vld [vmem:[#allocation12 + $0x40] sm:$0xff] }
  0x89   : > { %1010 = vmatpush.bf16.msrb.mxu0 %v1742_v34  ;;  %v1763_v34 = vld [vmem:[#allocation9 + $0x38] sm:$0xf0] }
  0x8a   : > { %1023 = vmatpush.bf16.msrb.mxu1 %v1870_v35  ;;  %v2208_v35 = vld [vmem:[#allocation9 + $0x12c] sm:$0xf]  ;;  %1047 = vmatpush.bf16.msrb.mxu3 %v1906_v23  ;;  %v2262_v23 = vld [vmem:[#allocation12 + $0xd8] sm:$0xff] }
  0x8b   : > { %v1894_v41 = vor.u32 %v2208_v35, %v1891_v38  ;;  %v2274_v35 = vld [vmem:[#allocation14 + $0x38] sm:$0xff] }
  0x8c   : > { %1035 = vmatpush.bf16.msrb.mxu2 %v1762_v32  ;;  %v647_v32 = vld [vmem:[#allocation11] sm:$0xf] }
  0x8d   : > { %1055 = vmatpush.bf16.msra.mxu0 %v1862_v36  ;;  %v1890_v36 = vor.u32 %v2210_v31, %v1889_v30  ;;  %v2259_v30 = vld [vmem:[#allocation12 + $0xc0] sm:$0xff]  ;;  %v2252_v31 = vld [vmem:[#allocation12 + $0x88] sm:$0xff] }
  0x8e   : > { %1068 = vmatpush.bf16.msra.mxu1 %v1990_v37  ;;  %v1766_v37 = vor.u32 %v2176_v33, %v1763_v34  ;;  %v2251_v33 = vld [vmem:[#allocation12 + $0x80] sm:$0xff]  ;;  %v650_v34 = vperm.slane %v647_v32, 1 }
  0x8f   : > { %1048 = vmatpush.bf16.msrb.mxu3 %v1890_v36 }
  0x90   : > { %1036 = vmatpush.bf16.msrb.mxu2 %v1746_v48 }
  0x91   : > { %1056 = vmatpush.bf16.msra.mxu0 %v1846_v42  ;;  %v1873_v42 = vld [vmem:[#allocation9 + $0x108] sm:$0xf] }
  0x92   : > { %1069 = vmatpush.bf16.msra.mxu1 %v1974_v43  ;;  %v2206_v43 = vld [vmem:[#allocation9 + $0x114] sm:$0xf0] }
  0x93   : > { %v1874_v49 = vor.u32 %v2206_v43, %v1873_v42 }
  0x95   : > { %1057 = vmatpush.bf16.msra.mxu0 %v1830_v52  ;;  %1049 = vmatpush.bf16.msrb.mxu3 %v1874_v49  ;;  %v467_v52 = vld [vmem:[#allocation8] sm:$0x3] }
  0x96   : > { %1070 = vmatpush.bf16.msra.mxu1 %v1958_v55  ;;  %v469_v53 = vperm.slane %v467_v52, 0  ;;  %v470_v54 = vperm.slane %v467_v52, 1  ;;  %v652_v52 = vperm.slane %v647_v32, 3 }
  0x99   : > { %1058 = vmatpush.bf16.msra.mxu0 %v1814_v0 }
  0x9a   : > { %1071 = vmatpush.bf16.msra.mxu1 %v1942_v3 }
  0x9d   : > { %1059 = vmatpush.bf16.msra.mxu0 %v1798_v12  ;;  %v2245_v12 = vld [vmem:[#allocation12 + $0x50] sm:$0xff] }
  0x9e   : > { %1072 = vmatpush.bf16.msra.mxu1 %v1926_v15  ;;  %v2244_v15 = vld [vmem:[#allocation12 + $0x48] sm:$0xff] }
  0xa1   : > { %1060 = vmatpush.bf16.msra.mxu0 %v1782_v24  ;;  %v2235_v24 = vld [vmem:[#allocation12] sm:$0xff] }
  0xa2   : > { %1073 = vmatpush.bf16.msra.mxu1 %v1910_v28  ;;  %v2260_v28 = vld [vmem:[#allocation12 + $0xc8] sm:$0xff] }
  0xa5   : > { %1061 = vmatpush.bf16.msra.mxu0 %v1766_v37 }
  0xa6   : > { %1074 = vmatpush.bf16.msra.mxu1 %v1894_v41  ;;  %v649_v41 = vperm.slane %v647_v32, 0 }
  0xa9   : > { %1062 = vmatpush.bf16.msra.mxu0 %v1750_v50 }
  0xaa   : > { %1075 = vmatpush.bf16.msra.mxu1 %v1878_v51 }
  0xe9   : > { %v562_v55 = vpop.f32.mrf.mxu0 }
  0xea   : > { %v563_v56 = vadd.f32 %v562_v55, %v469_v53  ;;  %v575_v57 = vpop.f32.mrf.mxu1 }
  0xeb   : > { %v576_v58 = vadd.f32 %v575_v57, %v470_v54 }
  0xec   : > { %v579_v59 = vmax.f32 %v563_v56, 0.0 }
  0xed   : > { %v580_v60 = vmax.f32 %v576_v58, 0.0 }
  0xee   : > { %v581_v61 = vpack.c.bf16 %v579_v59, %v579_v59  ;;  %v651_v59 = vperm.slane %v647_v32, 2 }
  0xef   : > { %v582_v0 = vpack.c.bf16 %v580_v60, %v580_v60 }
  0xf0   : > { %985 = vmatmul.bf16.vlgmr.msra.gmra.mxu2 %v581_v61  ;;  %1011 = vmatmul.bf16.vlgmr.msrb.gmra.mxu0 %v581_v61 }
  0xf1   : > { %998 = vmatmul.bf16.vlgmr.msra.gmra.mxu3 %v582_v0  ;;  %1024 = vmatmul.bf16.vlgmr.msrb.gmra.mxu1 %v582_v0  ;;  %v564_v2 = vpop.f32.mrf.mxu0 }
  0xf2   : > { %v577_v3 = vpop.f32.mrf.mxu1  ;;  %1362 = vmatpush.bf16.msra.mxu3 %v2250_v62  ;;  %1349 = vmatpush.bf16.msra.mxu2 %v2242_v63 }
  0xf3   : > { %1388 = vmatpush.bf16.msrb.mxu1 %v2266_v1  ;;  %1375 = vmatpush.bf16.msrb.mxu0 %v2258_v14 }
  0xf6   : > { %1363 = vmatpush.bf16.msra.mxu3 %v2249_v4  ;;  %1350 = vmatpush.bf16.msra.mxu2 %v2241_v5 }
  0xf7   : > { %1389 = vmatpush.bf16.msrb.mxu1 %v2265_v6  ;;  %1376 = vmatpush.bf16.msrb.mxu0 %v2257_v18 }
  0xfa   : > { %1364 = vmatpush.bf16.msra.mxu3 %v2248_v7  ;;  %1351 = vmatpush.bf16.msra.mxu2 %v2240_v8  ;;  %v2272_v8 = vld [vmem:[#allocation14 + $0x28] sm:$0xff] }
  0xfb   : > { %1390 = vmatpush.bf16.msrb.mxu1 %v2264_v16  ;;  %1377 = vmatpush.bf16.msrb.mxu0 %v2256_v22  ;;  %v2389_v16 = vld [vmem:[%s2948_s6] ss:$0 sm:$0xff] }
  0xfe   : > { %1365 = vmatpush.bf16.msra.mxu3 %v2247_v9  ;;  %1352 = vmatpush.bf16.msra.mxu2 %v2239_v10  ;;  %v2271_v9 = vld [vmem:[#allocation14 + $0x20] sm:$0xff]  ;;  %v2270_v10 = vld [vmem:[#allocation14 + $0x18] sm:$0xff] }
  0xff   : > { %1391 = vmatpush.bf16.msrb.mxu1 %v2263_v20  ;;  %1378 = vmatpush.bf16.msrb.mxu0 %v2255_v25 }
 0x100   : > { %1037 = vmatmul.bf16.vlgmr.msrb.gmra.mxu2 %v581_v61  ;;  %1063 = vmatmul.bf16.vlgmr.msra.gmra.mxu0 %v581_v61 }
 0x101   : > { %1050 = vmatmul.bf16.vlgmr.msrb.gmra.mxu3 %v582_v0  ;;  %1076 = vmatmul.bf16.vlgmr.msra.gmra.mxu1 %v582_v0 }
 0x102   : > { %1366 = vmatpush.bf16.msra.mxu3 %v2246_v11  ;;  %1353 = vmatpush.bf16.msra.mxu2 %v2238_v13  ;;  %v2269_v11 = vld [vmem:[#allocation14 + $0x10] sm:$0xff]  ;;  %v2267_v13 = vld [vmem:[#allocation14] sm:$0xff] }
 0x103   : > { %1392 = vmatpush.bf16.msrb.mxu1 %v2262_v23  ;;  %1379 = vmatpush.bf16.msrb.mxu0 %v2254_v27 }
 0x106   : > { %1367 = vmatpush.bf16.msra.mxu3 %v2245_v12  ;;  %1354 = vmatpush.bf16.msra.mxu2 %v2237_v17  ;;  %v2268_v12 = vld [vmem:[#allocation14 + $0x8] sm:$0xff] }
 0x107   : > { %1393 = vmatpush.bf16.msrb.mxu1 %v2261_v26  ;;  %1380 = vmatpush.bf16.msrb.mxu0 %v2253_v29  ;;  %v2390_v29 = vld [vmem:[%s2950_s8] ss:$0 sm:$0xff] }
 0x10a   : > { %1368 = vmatpush.bf16.msra.mxu3 %v2244_v15  ;;  %1355 = vmatpush.bf16.msra.mxu2 %v2236_v21 }
 0x10b   : > { %1394 = vmatpush.bf16.msrb.mxu1 %v2260_v28  ;;  %1381 = vmatpush.bf16.msrb.mxu0 %v2252_v31 }
 0x10e   : > { %1369 = vmatpush.bf16.msra.mxu3 %v2243_v19  ;;  %1356 = vmatpush.bf16.msra.mxu2 %v2235_v24 }
 0x10f   : > { %1395 = vmatpush.bf16.msrb.mxu1 %v2259_v30  ;;  %1382 = vmatpush.bf16.msrb.mxu0 %v2251_v33 }
 0x112   : > { %1471 = vmatpush.bf16.msrb.mxu2 %v2274_v35 }
 0x116   : > { %1472 = vmatpush.bf16.msrb.mxu2 %v2273_v39 }
 0x11a   : > { %1473 = vmatpush.bf16.msrb.mxu2 %v2272_v8 }
 0x11e   : > { %1474 = vmatpush.bf16.msrb.mxu2 %v2271_v9 }
 0x122   : > { %1475 = vmatpush.bf16.msrb.mxu2 %v2270_v10 }
 0x126   : > { %1476 = vmatpush.bf16.msrb.mxu2 %v2269_v11 }
 0x12a   : > { %1477 = vmatpush.bf16.msrb.mxu2 %v2268_v12 }
 0x12e   : > { %1478 = vmatpush.bf16.msrb.mxu2 %v2267_v13 }
 0x16d   : > { %v1012_v36 = vpop.f32.mrf.mxu0 }
 0x16e   : > { %v1013_v37 = vadd.f32 %v1012_v36, %v650_v34  ;;  %v1025_v38 = vpop.f32.mrf.mxu1 }
 0x170   : > { %v1026_v40 = vadd.f32 %v1025_v38, %v1013_v37 }
 0x172   : > { %v1082_v42 = vmax.f32 %v1026_v40, 0.0 }
 0x173   : > { %v986_v43 = vpop.f32.mrf.mxu2 }
 0x174   : > { %v1086_v44 = vpack.c.bf16 %v1082_v42, %v1082_v42  ;;  %v987_v45 = vadd.f32 %v986_v43, %v649_v41  ;;  %v999_v46 = vpop.f32.mrf.mxu3 }
 0x175   : > { %v1014_v47 = vpop.f32.mrf.mxu0 }
 0x176   : > { %v1000_v48 = vadd.f32 %v999_v46, %v987_v45  ;;  %v1027_v49 = vpop.f32.mrf.mxu1  ;;  %1370 = vmatmul.bf16.vlgmr.msra.gmra.mxu3 %v1086_v44 }
 0x178   : > { %v1081_v50 = vmax.f32 %v1000_v48, 0.0 }
 0x17a   : > { %v1085_v51 = vpack.c.bf16 %v1081_v50, %v1081_v50 }
 0x17b   : > { %v988_v53 = vpop.f32.mrf.mxu2 }
 0x17c   : > { %v1001_v54 = vpop.f32.mrf.mxu3  ;;  %1357 = vmatmul.bf16.vlgmr.msra.gmra.mxu2 %v1085_v51 }
 0x17d   : > { %v1064_v55 = vpop.f32.mrf.mxu0 }
 0x17e   : > { %v1065_v56 = vadd.f32 %v1064_v55, %v652_v52  ;;  %v1077_v57 = vpop.f32.mrf.mxu1 }
 0x180   : > { %v1078_v58 = vadd.f32 %v1077_v57, %v1065_v56 }
 0x182   : > { %v1084_v60 = vmax.f32 %v1078_v58, 0.0 }
 0x183   : > { %v1038_v61 = vpop.f32.mrf.mxu2 }
 0x184   : > { %v1088_v62 = vpack.c.bf16 %v1084_v60, %v1084_v60  ;;  %v1039_v63 = vadd.f32 %v1038_v61, %v651_v59  ;;  %v1051_v0 = vpop.f32.mrf.mxu3 }
 0x185   : > { %v1066_v1 = vpop.f32.mrf.mxu0 }
 0x186   : > { %v1052_v2 = vadd.f32 %v1051_v0, %v1039_v63  ;;  %v1079_v3 = vpop.f32.mrf.mxu1  ;;  %1396 = vmatmul.bf16.vlgmr.msrb.gmra.mxu1 %v1088_v62 }
 0x188   : > { %v1083_v4 = vmax.f32 %v1052_v2, 0.0 }
 0x18a   : > { %v1087_v5 = vpack.c.bf16 %v1083_v4, %v1083_v4 }
 0x18b   : > { %v1040_v6 = vpop.f32.mrf.mxu2 }
 0x18c   : > { %v1053_v7 = vpop.f32.mrf.mxu3  ;;  %1383 = vmatmul.bf16.vlgmr.msrb.gmra.mxu0 %v1087_v5 }
 0x1f9   : > { %v1371_v14 = vpop.f32.mrf.mxu3 }
 0x1ff   : > { %v1358_v15 = vpop.f32.mrf.mxu2 }
 0x200   : > { %v1359_v19 = vadd.f32 %v2389_v16, %v1358_v15 }
 0x201   : > { %v1373_v17 = vpop.f32.mrf.mxu3 }
 0x202   : > { %v1372_v21 = vadd.f32 %v1371_v14, %v1359_v19 }
 0x203   : > { %v1397_v18 = vpop.f32.mrf.mxu1 }
 0x207   : > { %v1360_v20 = vpop.f32.mrf.mxu2 }
 0x209   : > { %v1384_v22 = vpop.f32.mrf.mxu0 }
 0x20a   : > { %v1385_v23 = vadd.f32 %v1384_v22, %v1372_v21 }
 0x20b   : > { %v1399_v24 = vpop.f32.mrf.mxu1 }
 0x20c   : > { %v1398_v25 = vadd.f32 %v1397_v18, %v1385_v23 }
 0x20e   : > { %v1401_v26 = vmax.f32 %v1398_v25, 0.0 }
 0x210   : > { %v1402_v27 = vpack.c.bf16 %v1401_v26, %v1401_v26 }
 0x211   : > { %v1386_v28 = vpop.f32.mrf.mxu0 }
 0x212   : > { %1479 = vmatmul.bf16.vlgmr.msrb.gmra.mxu2 %v1402_v27 }
 0x295   : > { %v1480_v30 = vpop.f32.mrf.mxu2 }
 0x296   : > { %v1481_v31 = vadd.f32 %v2390_v29, %v1480_v30 }
 0x298   : > { %1484 = vmax.xlane.f32.xlu0 %v1481_v31 }
 0x29d   : > { %v1482_v32 = vpop.f32.mrf.mxu2 }
 0x30b   : > { %v1485_v33 = vpop.xlane.xlu0 %1484 }
 0x30c   : > { %v1486_v34 = vsub.f32 %v1481_v31, %v1485_v33 }
 0x30e   : > { %v1487_v35 = vmul.f32 1.442695, %v1486_v34 }
 0x310   : > { %2391 = vpow2.f32 %v1487_v35 }
 0x316   : > { %v2392_v36 = vpop.eup %2391 }
 0x317   : > { %1489 = vadd.xlane.f32.xlu0 %v2392_v36 }
 0x38a   : > { %v1490_v37 = vpop.xlane.xlu0 %1489 }
 0x38b   : > { %2393 = vrcp.f32 %v1490_v37  ;;  %v1502_v41 = vand.u32 2147483648, %v1490_v37  ;;  %v1500_v43 = vand.u32 2147483647, %v1490_v37  ;;  %vm1496_vm2 = vweird.f32 %v1490_v37 }
 0x38d   : > { %v1503_v45 = vor.u32 1.1754944e-38, %v1502_v41  ;;  %vm1501_vm4 = vcmp.eq.f32.partialorder %v1500_v43, 8.507059e+37 }
 0x391   : > { %v2394_v38 = vpop.eup %2393 }
 0x392   : > { %v1492_v39 = vmul.f32 %v2394_v38, %v1490_v37  ;;  %vm1497_vm1 = vweird.f32 %v2394_v38 }
 0x393   : > { %vm1498_vm3 = vmor %vm1496_vm2, %vm1497_vm1 }
 0x394   : > { %v1493_v40 = vsub.f32 1.0, %v1492_v39 }
 0x396   : > { %v1494_v42 = vmul.f32 %v2394_v38, %v1493_v40 }
 0x398   : > { %v1495_v44 = vadd.f32 %v2394_v38, %v1494_v42 }
 0x39a   : > { %v1499_v46 = vsel %vm1498_vm3, %v2394_v38, %v1495_v44 }
 0x39b   : > { %v1504_v47 = vsel %vm1501_vm4, %v1503_v45, %v1499_v46 }
 0x39c   : > { %v1505_v48 = vmul.f32 %v2392_v36, %v1504_v47 }
 0x39e   : > { %1507 = vst.msk [vmem:[%s444_s29] sm:$0xff] %vm1506_vm5, %v1505_v48 }
 0x39f   : > { %2632 = shalt.err (!%p2629_p9)
}
 0x3a0   : > { %2301 = dma.vmem_to_hbm [thread:$0]  (%p2845_p4), %s1522_s13, 128, %s1524_s14, %s1509_s16  }
 0x3a1 PF: > { %s1535_s15 = sand.u32 1, %s2671_s30   ;;  %p2967_p10 = scmp.ge.s32.totalorder %s2683_s12, 2 }
 0x3a2   : > { %s1536_s3 = scalar_lea.sflag [#allocation5], %s1535_s15 }
 0x3a3   : > { %p2327_p13 = pnand %p2967_p10, %p2849_p6 }
 0x3a5   : > { %p2328_p11 = pneg %p2327_p13 }
 0x3a7   : > { %2666 = dma.done.wait (%p2328_p11), %s1536_s3, 128  }
 0x3a8   : > { %2668 = vsyncadd (%p2328_p11), %s1536_s3, 4294967168  ;;  %p25_p0 = scmp.ge.s32.totalorder %s2819_s24, 4   ;;  %s2968_s30 = smov %s2675_s10 }
 0x3a9   : > { %s2969_s10 = smov %s2679_s11  ;;  %s2970_s11 = smov %s2830_s26 }
 0x3aa   : > { %s2971_s12 = smov %s2819_s24  ;;  %27 = sbr.rel (!%p25_p0) target bundleno = 13 (0xd), region = 125 }
 0x3af   :  { %1542 = vsyncpa [#allocation4], 1 }
 0x3b0   :  { %1544 = vsyncpa [#allocation4 + $0x1], 1 }
 0x3b1   :  { %1545 = vsyncpa [#allocation7], 1 }
 0x3b2   :  { %1546 = vsyncpa [#allocation10], 1 }
 0x3b3   :  { %1547 = vsyncpa [#allocation13], 1 }
 0x3b4   :  { %1548 = vsyncpa [#allocation5], 1 }
 0x3b5   :  { %1550 = vsyncpa [#allocation5 + $0x1], 1 }

</bundles_post_ra>
